<compile_context>
chip_gen: v6e
topology: v6e:2x2x1
jax: 0.10.0
libtpu: 0.0.40
codegen_flags: <defaults>
</compile_context>

<pallas_src>
import functools

import jax
import jax.numpy as jnp
from jax.experimental import pallas as pl
from jax.experimental.pallas import tpu as pltpu


# ---------------------------------------------------------------------------
# Kernel bodies
# ---------------------------------------------------------------------------
def _norm_quant(x_raw, w_raw, io_dtype, *, eps, abits):
    """RMSNorm (+ optional per-token symmetric fake quant).  Returns io_dtype."""
    x = x_raw.astype(jnp.float32)                           # (tm, H)
    # TODO(synk): on v7x the lane reduce could optionally move to the idle MXU
    # via dot(x*x, ones(H,1)); kept on the VPU here for simplicity/accuracy.
    var = jnp.mean(x * x, axis=-1, keepdims=True)           # (tm, 1)
    inv = jax.lax.rsqrt(var + eps)
    # HF LlamaRMSNorm casts the normalized value back to the activation dtype
    # *before* multiplying by the weight.
    normed = (x * inv).astype(io_dtype)
    y = normed * w_raw.astype(io_dtype)                     # (tm, H), io dtype

    if abits >= 16:
        return y                                            # fast path: no fp32 round trip

    qmax = float(2 ** (abits - 1) - 1)
    # Per-token max-abs on the io-dtype product (bf16 VALU-native on v6e/v7x).
    amax = jnp.max(jnp.abs(y), axis=-1, keepdims=True).astype(jnp.float32)
    scale = jnp.maximum(amax * (1.0 / qmax), 1e-8)          # (tm, 1), no divide
    inv_scale = pl.reciprocal(scale, approx=True)           # per-row, EUP slot
    q = jnp.clip(jnp.round(y.astype(jnp.float32) * inv_scale), -qmax, qmax)
    return (q * scale).astype(io_dtype)


def _rmsnorm_kernel(x_ref, w_ref, o_ref, *, eps, abits):
    o_ref[...] = _norm_quant(x_ref[...], w_ref[...], o_ref.dtype,
                             eps=eps, abits=abits)


def _rmsnorm_reorder_kernel(x_ref, w_ref, idx_ref, o_ref, *, eps, abits):
    # RMS statistics and the per-token quant scale are permutation invariant,
    # so permuting after quant == permuting before quant (exact).
    y = _norm_quant(x_ref[...], w_ref[...], o_ref.dtype, eps=eps, abits=abits)
    # Fused lane gather on the VMEM-resident tile.  Per the performance
    # review: 1-D index vector (no (tm, H) broadcast index tile); gather runs
    # on a 32-bit view so the lane dynamic-gather path applies.
    y32 = y.astype(jnp.float32)
    o_ref[...] = jnp.take(y32, idx_ref[0], axis=1).astype(o_ref.dtype)


# ---------------------------------------------------------------------------
# Build-time sizing helpers (trace-time decisions, never runtime fallbacks)
# ---------------------------------------------------------------------------
def _chip_profile():
    """Returns (vmem_bytes_per_core, has_two_tensorcores)."""
    kind = ""
    try:
        kind = jax.devices()[0].device_kind.lower()
    except Exception:
        pass
    if ("v5" in kind) or ("v6" in kind):
        return 128 * 1024 * 1024, False          # v5e/v5p/v6e: 128 MiB, 1 TC grid
    if ("v7" in kind) or ("7x" in kind):
        return 64 * 1024 * 1024, True            # v7x: 64 MiB per TC, 2 TCs share grid
    return 64 * 1024 * 1024, False               # unknown: size conservatively


def _choose_row_tile(n_rows, hidden, itemsize, *, quantized, fused_reorder,
                     vmem_budget_bytes, two_tc, max_tile=2048):
    """Largest row tile whose full VMEM footprint fits the per-chip budget.

    Footprint per row = double-buffered in + out blocks (io dtype) plus the
    fp32 intermediates that live in the kernel body (x in f32, quant temps,
    and the gathered copy / index when the reorder is fused).
    """
    sublane = max(8, 32 // max(itemsize, 1))      # 8 f32, 16 bf16, 32 int8
    io_bytes = 4 * hidden * itemsize              # 2x input + 2x output buffers
    n_f32_temps = 3 if quantized else 1
    if fused_reorder:
        n_f32_temps += 2
    per_row = io_bytes + n_f32_temps * hidden * 4
    tile = max(sublane, vmem_budget_bytes // max(per_row, 1))
    tile = min(tile, max_tile)
    rows_ceil = -(-n_rows // sublane) * sublane
    tile = min(tile, rows_ceil)
    # Only split a single-block workload in two when 2 TensorCores can share
    # the ("parallel") grid axis (v7x); on v5e/v6e the grid is a serial loop.
    if two_tc and tile >= rows_ceil and rows_ceil >= 2 * sublane:
        tile = -(-(rows_ceil // 2) // sublane) * sublane
    tile = max(sublane, (tile // sublane) * sublane)
    return int(tile)


# ---------------------------------------------------------------------------
# Public wrapper
# ---------------------------------------------------------------------------
def qllama_rmsnorm(hidden_states, weight, *, eps=1e-6, abits=8,
                   reorder_index=None, row_tile=None, fuse_reorder=False):
    """hidden_states: (..., H); weight: (H,). Returns same shape/dtype.

    `fuse_reorder` is a build-time flag (no try/except path selection).  The
    default keeps the kernel permute-free and applies one XLA gather after the
    kernel; set True to fuse the lane gather into the kernel.
    """
    orig_shape = hidden_states.shape
    orig_dtype = hidden_states.dtype
    H = orig_shape[-1]
    x = hidden_states.reshape(-1, H)
    N = x.shape[0]

    itemsize = jnp.dtype(orig_dtype).itemsize
    vmem_bytes, two_tc = _chip_profile()
    fused = fuse_reorder and (reorder_index is not None)
    if row_tile is None:
        row_tile = _choose_row_tile(
            N, H, itemsize,
            quantized=(abits < 16), fused_reorder=fused,
            vmem_budget_bytes=(vmem_bytes * 3) // 4, two_tc=two_tc)

    # Ragged final block: Pallas masks out-of-bounds writes.  Rows are fully
    # independent, so the unspecified data read in the masked rows is benign.
    grid = (pl.cdiv(N, row_tile),)

    w2d = weight.reshape(1, H)
    x_spec = pl.BlockSpec((row_tile, H), lambda i: (i, 0))
    w_spec = pl.BlockSpec((1, H), lambda i: (0, 0))
    o_spec = pl.BlockSpec((row_tile, H), lambda i: (i, 0))
    out_shape = jax.ShapeDtypeStruct((N, H), orig_dtype)
    compiler_params = pltpu.CompilerParams(
        dimension_semantics=("parallel",),
        vmem_limit_bytes=min(vmem_bytes - (8 << 20), 100 << 20),
    )

    if fused:
        idx2d = jnp.asarray(reorder_index, dtype=jnp.int32).reshape(1, H)
        out = pl.pallas_call(
            functools.partial(_rmsnorm_reorder_kernel, eps=eps, abits=abits),
            grid=grid,
            in_specs=[x_spec, w_spec, pl.BlockSpec((1, H), lambda i: (0, 0))],
            out_specs=o_spec,
            out_shape=out_shape,
            compiler_params=compiler_params,
        )(x, w2d, idx2d)
    else:
        out = pl.pallas_call(
            functools.partial(_rmsnorm_kernel, eps=eps, abits=abits),
            grid=grid,
            in_specs=[x_spec, w_spec],
            out_specs=o_spec,
            out_shape=out_shape,
            compiler_params=compiler_params,
        )(x, w2d)
        if reorder_index is not None:
            # Permutation commutes exactly with the per-token quantization.
            # TODO(synk): in production, fold this static permutation into the
            # downstream linear layer's weights offline (Atom-style) so the
            # runtime permute / extra HBM pass disappears entirely.
            out = jnp.take(out, jnp.asarray(reorder_index), axis=-1)

    return out.reshape(orig_shape)


# ---------------------------------------------------------------------------
# Pure-JAX reference (mirrors the PyTorch module's forward)
# ---------------------------------------------------------------------------
def _reference(hidden_states, weight, *, eps=1e-6, abits=8, reorder_index=None):
    dtype = hidden_states.dtype
    x = hidden_states.astype(jnp.float32)
    var = jnp.mean(x * x, axis=-1, keepdims=True)
    normed = (x * jax.lax.rsqrt(var + eps)).astype(dtype)
    y = normed * weight.astype(dtype)
    if reorder_index is not None:
        y = jnp.take(y, reorder_index, axis=-1)
    if abits < 16:
        qmax = float(2 ** (abits - 1) - 1)
        y32 = y.astype(jnp.float32)
        amax = jnp.max(jnp.abs(y32), axis=-1, keepdims=True)
        scale = jnp.maximum(amax / qmax, 1e-8)
        q = jnp.clip(jnp.round(y32 / scale), -qmax, qmax)
        y = (q * scale).astype(dtype)
    return y


if __name__ == "__main__":
    key = jax.random.PRNGKey(0)
    ks = jax.random.split(key, 8)

    # Case 1: small f32, per-token int8 fake quant, channel reorder (flip).
    B, S, H = 2, 8, 32
    x1 = jax.random.normal(ks[0], (B, S, H), dtype=jnp.float32)
    w1 = jnp.ones((H,), jnp.float32) + 0.1 * jax.random.normal(ks[1], (H,), jnp.float32)
    idx1 = jnp.flip(jnp.arange(H, dtype=jnp.int32))
    out1 = jax.block_until_ready(
        qllama_rmsnorm(x1, w1, eps=1e-6, abits=8, reorder_index=idx1))
    ref1 = _reference(x1, w1, eps=1e-6, abits=8, reorder_index=idx1)
    assert out1.shape == x1.shape and out1.dtype == x1.dtype
    # Allow one quant level of slack: approx reciprocal / reduction order can
    # flip a rounding level.
    tol1 = 1.5 * float(jnp.max(jnp.abs(ref1))) / 127.0 + 1e-4
    assert jnp.allclose(out1, ref1, atol=tol1, rtol=0), "case1 mismatch"

    # Case 2: bf16 I/O, lane-aligned hidden, ragged row count (20 rows, single
    # masked block), quantized, random permutation reorder.
    B, S, H = 2, 10, 256
    x2 = jax.random.normal(ks[2], (B, S, H), dtype=jnp.float32).astype(jnp.bfloat16)
    w2 = (jnp.ones((H,), jnp.float32)
          + 0.1 * jax.random.normal(ks[3], (H,), jnp.float32)).astype(jnp.bfloat16)
    perm = jax.random.permutation(ks[4], H).astype(jnp.int32)
    out2 = jax.block_until_ready(
        qllama_rmsnorm(x2, w2, eps=1e-6, abits=8, reorder_index=perm))
    ref2 = _reference(x2, w2, eps=1e-6, abits=8, reorder_index=perm)
    assert out2.shape == x2.shape and out2.dtype == jnp.bfloat16
    m2 = float(jnp.max(jnp.abs(ref2.astype(jnp.float32))))
    tol2 = 1.5 * m2 / 127.0 + m2 / 64.0          # one quant level + bf16 rounding
    assert jnp.allclose(out2.astype(jnp.float32), ref2.astype(jnp.float32),
                        atol=tol2, rtol=0), "case2 mismatch"

    # Case 3: pure RMSNorm fast path (abits=16, no reorder), f32.
    B, S, H = 2, 8, 128
    x3 = jax.random.normal(ks[5], (B, S, H), dtype=jnp.float32)
    w3 = jnp.ones((H,), jnp.float32)
    out3 = jax.block_until_ready(qllama_rmsnorm(x3, w3, eps=1e-6, abits=16))
    ref3 = _reference(x3, w3, eps=1e-6, abits=16)
    assert jnp.allclose(out3, ref3, atol=1e-5, rtol=1e-5), "case3 mismatch"

    # Case 4: ragged multi-block grid (21 rows, row_tile=8 -> 3 blocks, last
    # block masked), quantized, no reorder.
    B, S, H = 3, 7, 128
    x4 = jax.random.normal(ks[6], (B, S, H), dtype=jnp.float32)
    w4 = jnp.ones((H,), jnp.float32) + 0.1 * jax.random.normal(ks[7], (H,), jnp.float32)
    out4 = jax.block_until_ready(
        qllama_rmsnorm(x4, w4, eps=1e-6, abits=8, row_tile=8))
    ref4 = _reference(x4, w4, eps=1e-6, abits=8)
    tol4 = 1.5 * float(jnp.max(jnp.abs(ref4))) / 127.0 + 1e-4
    assert jnp.allclose(out4, ref4, atol=tol4, rtol=0), "case4 mismatch"

    print("KERNEL_OK")
</pallas_src>

<mosaic_0001>
module attributes {stable_mosaic.version = 11 : i64} {
  func.func @_rmsnorm_kernel(%arg0: i32, %arg1: memref<16x32xf32, #tpu.memory_space<vmem>>, %arg2: memref<1x32xf32, #tpu.memory_space<vmem>>, %arg3: memref<16x32xf32, #tpu.memory_space<vmem>>) attributes {dimension_semantics = [#tpu.dimension_semantics<parallel>], iteration_bounds = array<i64: 1>, scalar_prefetch = 0 : i64, scratch_operands = 0 : i64, tpu.core_type = #tpu.core_type<tc>, window_params = [{transform_indices = @transform_0, window_bounds = array<i64: 16, 32>}, {pipeline_mode = #tpu.pipeline_mode<synchronous>, transform_indices = @transform_1, window_bounds = array<i64: 1, 32>}, {transform_indices = @transform_2, window_bounds = array<i64: 16, 32>}]} {
    %c0 = arith.constant 0 : index
    %c0_0 = arith.constant 0 : index
    %0 = vector.load %arg1[%c0, %c0_0] : memref<16x32xf32, #tpu.memory_space<vmem>>, vector<16x32xf32>
    %c0_1 = arith.constant 0 : index
    %c0_2 = arith.constant 0 : index
    %1 = vector.load %arg2[%c0_1, %c0_2] : memref<1x32xf32, #tpu.memory_space<vmem>>, vector<1x32xf32>
    %2 = arith.mulf %0, %0 : vector<16x32xf32>
    %cst = arith.constant dense<0.000000e+00> : vector<16xf32>
    %3 = vector.multi_reduction <add>, %2, %cst [1] : vector<16x32xf32> to vector<16xf32>
    %4 = vector.shape_cast %3 : vector<16xf32> to vector<16x1xf32>
    %cst_3 = arith.constant 3.200000e+01 : f32
    %5 = vector.broadcast %cst_3 : f32 to vector<16x1xf32>
    %6 = arith.divf %4, %5 : vector<16x1xf32>
    %cst_4 = arith.constant 9.99999997E-7 : f32
    %7 = vector.broadcast %cst_4 : f32 to vector<16x1xf32>
    %8 = arith.addf %6, %7 : vector<16x1xf32>
    %9 = math.rsqrt %8 : vector<16x1xf32>
    %10 = vector.broadcast %9 : vector<16x1xf32> to vector<16x32xf32>
    %11 = arith.mulf %0, %10 : vector<16x32xf32>
    %12 = vector.broadcast %1 : vector<1x32xf32> to vector<16x32xf32>
    %13 = arith.mulf %11, %12 : vector<16x32xf32>
    %14 = math.absf %13 : vector<16x32xf32>
    %cst_5 = arith.constant dense<0xFF800000> : vector<16xf32>
    %15 = vector.multi_reduction <maximumf>, %14, %cst_5 [1] : vector<16x32xf32> to vector<16xf32>
    %16 = vector.shape_cast %15 : vector<16xf32> to vector<16x1xf32>
    %cst_6 = arith.constant 0.00787401571 : f32
    %17 = vector.broadcast %cst_6 : f32 to vector<16x1xf32>
    %18 = arith.mulf %16, %17 : vector<16x1xf32>
    %cst_7 = arith.constant 9.99999993E-9 : f32
    %19 = vector.broadcast %cst_7 : f32 to vector<16x1xf32>
    %20 = arith.maximumf %18, %19 : vector<16x1xf32>
    %21 = tpu.reciprocal %20 {approx = true} : vector<16x1xf32> -> vector<16x1xf32>
    %22 = vector.broadcast %21 : vector<16x1xf32> to vector<16x32xf32>
    %23 = arith.mulf %13, %22 : vector<16x32xf32>
    %24 = math.roundeven %23 : vector<16x32xf32>
    %cst_8 = arith.constant -1.270000e+02 : f32
    %cst_9 = arith.constant 1.270000e+02 : f32
    %25 = vector.broadcast %cst_8 : f32 to vector<16x32xf32>
    %26 = arith.maximumf %25, %24 : vector<16x32xf32>
    %27 = vector.broadcast %cst_9 : f32 to vector<16x32xf32>
    %28 = arith.minimumf %27, %26 : vector<16x32xf32>
    %29 = vector.broadcast %20 : vector<16x1xf32> to vector<16x32xf32>
    %30 = arith.mulf %28, %29 : vector<16x32xf32>
    %c0_10 = arith.constant 0 : index
    %c0_11 = arith.constant 0 : index
    %31 = vector.load %arg3[%c0_10, %c0_11] : memref<16x32xf32, #tpu.memory_space<vmem>>, vector<16x32xf32>
    tpu.vector_store %arg3[%c0_10, %c0_11], %30 {strides = array<i32>} : memref<16x32xf32, #tpu.memory_space<vmem>>, vector<16x32xf32>,
    return
  }
  func.func @transform_0(%arg0: i32) -> (i32, i32) {
    %c0_i32 = arith.constant 0 : i32
    %c0_i32_0 = arith.constant 0 : i32
    return %arg0, %c0_i32 : i32, i32
  }
  func.func @transform_1(%arg0: i32) -> (i32, i32) {
    %c0_i32 = arith.constant 0 : i32
    %c0_i32_0 = arith.constant 0 : i32
    %c0_i32_1 = arith.constant 0 : i32
    return %c0_i32, %c0_i32_0 : i32, i32
  }
  func.func @transform_2(%arg0: i32) -> (i32, i32) {
    %c0_i32 = arith.constant 0 : i32
    %c0_i32_0 = arith.constant 0 : i32
    return %arg0, %c0_i32 : i32, i32
  }
}

</mosaic_0001>

<bundles_post_ra>
// kernel: tpu_custom_call.1
= control target key start
LH: loop header
LB: loop body
LE: loop exit
PB: predicated region body
PF: predicated region fallthrough
CT: control target
= control target key end

     0   :  { %7 = vsyncpa [#allocation3], 0  ;;  %s213_s0 = inlined_call_operand.hbm [shape: f32[16,32], index: 0, kind: input, shape index: {}]   ;;  %s214_s1 = inlined_call_operand.vmem [shape: f32[1,32], index: 1, kind: input, shape index: {}]   ;;  %s215_s2 = inlined_call_operand.hbm [shape: f32[16,32], index: 2, kind: output, shape index: {}]  }
   0x1   :  { %8 = vsyncpa [#allocation4], 0  ;;  %s173_s9 = smov [#allocation2]  }
   0x2   :  { %s14_s10 = sshll.u32 %s173_s9, 4  ;;  %s15_s10 = int_to_ptr.vmem [resolvable:$true] %s14_s10 }
   0x3   :  { %s137_s11 = scalar_lea.vmem %s15_s10, 256  ;;  %p142_p1 = scmp.lt.s32.totalorder %s15_s10, %s15_s10 }
   0x4   :  { %p138_p0 = scmp.ne.s32.totalorder %s15_s10, %s137_s11  ;;  %p143_p2 = scmp.lt.s32.totalorder %s137_s11, %s137_s11 }
   0x6   :  { %p144_p3 = por %p143_p2, %p142_p1 }
   0x8   :  { %p145_p4 = pnand %p144_p3, %p138_p0 }
   0xa   :  { %148 = shalt.err (!%p145_p4)
}
   0xb   :  { %s174_s12 = smov 128   ;;  %s175_s13 = smov 8  }
   0xc   :  { %20 = dma.hbm_to_vmem [thread:$0]  %s213_s0, 256, %s15_s10, [#allocation3], %s174_s12, %s174_s12, %s175_s13  }
   0xd   :  { %169 = dma.done.wait [#allocation3], 256  }
   0xe   :  { %170 = vsyncadd [#allocation3], 4294967040  ;;  %v26_v0 = vld [vmem:[#allocation2] sm:$0xff]  ;;  %vm31_vm0 = vcmask 261120   ;;  %v27_v1 = vld [vmem:[#allocation2 + $0x8] sm:$0xff] }
   0xf   :  { %v29_v2 = vmul.f32 %v26_v0, %v26_v0  ;;  %v30_v3 = vmul.f32 %v27_v1, %v27_v1  ;;  %v98_v13 = vld [vmem:[%s214_s1] ss:$0 sm:$0xff]  ;;  %s176_s1 = smov [#allocation5]  }
  0x10   :  { %s86_s17 = sshll.u32 %s176_s1, 4  ;;  %s87_s17 = int_to_ptr.vmem [resolvable:$true] %s86_s17 }
  0x11   :  { %v32_v4 = vsel %vm31_vm0, %v29_v2, 0.0  ;;  %v35_v5 = vsel %vm31_vm0, %v30_v3, 0.0  ;;  %s149_s18 = scalar_lea.vmem %s87_s17, 256  ;;  %p154_p6 = scmp.lt.s32.totalorder %s87_s17, %s87_s17 }
  0x12   :  { %33 = vadd.xlane.f32.xlu0 %v32_v4  ;;  %p150_p5 = scmp.ne.s32.totalorder %s87_s17, %s149_s18  ;;  %p155_p7 = scmp.lt.s32.totalorder %s149_s18, %s149_s18 }
  0x14   :  { %p156_p8 = por %p155_p7, %p154_p6 }
  0x16   :  { %36 = vadd.xlane.f32.xlu0 %v35_v5  ;;  %p157_p9 = pnand %p156_p8, %p150_p5 }
  0x9b   :  { %v34_v6 = vpop.xlane.xlu0 %33 }
  0x9c   :  { %v39_v7 = vmul.f32 0.03125, %v34_v6 }
  0x9e   :  { %v41_v8 = vadd.f32 1e-06, %v39_v7 }
  0x9f   :  { %v37_v9 = vpop.xlane.xlu0 %36 }
  0xa0   :  { %121 = vrsqrt.f32 %v41_v8  ;;  %v40_v10 = vmul.f32 0.03125, %v37_v9 }
  0xa2   :  { %v42_v11 = vadd.f32 1e-06, %v40_v10 }
  0xa4   :  { %123 = vrsqrt.f32 %v42_v11 }
  0xad   :  { %v122_v12 = vpop.eup %121 }
  0xae   :  { %v45_v14 = vmul.f32 %v122_v12, %v26_v0 }
  0xb0   :  { %v53_v15 = vmul.f32 %v98_v13, %v45_v14 }
  0xb1   :  { %v124_v16 = vpop.eup %123 }
  0xb2   :  { %v55_v17 = vand.u32 2147483647, %v53_v15  ;;  %v46_v18 = vmul.f32 %v124_v16, %v27_v1 }
  0xb4   :  { %v57_v19 = vsel %vm31_vm0, %v55_v17, -inf  ;;  %v54_v20 = vmul.f32 %v98_v13, %v46_v18 }
  0xb5   :  { %58 = vmax.xlane.f32.xlu1 %v57_v19 }
  0xb6   :  { %v56_v21 = vand.u32 2147483647, %v54_v20 }
  0xb8   :  { %v60_v22 = vsel %vm31_vm0, %v56_v21, -inf }
  0xb9   :  { %61 = vmax.xlane.f32.xlu1 %v60_v22 }
 0x13e   :  { %v59_v23 = vpop.xlane.xlu1 %58 }
 0x13f   :  { %v63_v24 = vmul.f32 0.007874016, %v59_v23 }
 0x141   :  { %v65_v25 = vmax.f32 %v63_v24, 1e-08 }
 0x142   :  { %v62_v26 = vpop.xlane.xlu1 %61 }
 0x143   :  { %125 = vrcp.f32 %v65_v25  ;;  %v64_v27 = vmul.f32 0.007874016, %v62_v26 }
 0x145   :  { %v66_v28 = vmax.f32 %v64_v27, 1e-08 }
 0x147   :  { %127 = vrcp.f32 %v66_v28 }
 0x150   :  { %v126_v29 = vpop.eup %125 }
 0x151   :  { %v69_v30 = vmul.f32 %v126_v29, %v53_v15 }
 0x153   :  { %v103_v31 = vcvt.f32.s32 %v69_v30  ;;  %v101_v35 = vand.u32 2147483647, %v69_v30  ;;  %v106_v37 = vand.u32 2147483648, %v69_v30 }
 0x154   :  { %v128_v32 = vpop.eup %127 }
 0x155   :  { %v104_v33 = vcvt.s32.f32 %v103_v31  ;;  %v70_v34 = vmul.f32 %v128_v32, %v54_v20  ;;  %vm102_vm1 = vcmp.lt.f32.partialorder %v101_v35, 8388608.0 }
 0x157   :  { %v105_v36 = vand.u32 2147483647, %v104_v33  ;;  %v111_v38 = vcvt.f32.s32 %v70_v34  ;;  %v109_v41 = vand.u32 2147483647, %v70_v34  ;;  %v114_v44 = vand.u32 2147483648, %v70_v34 }
 0x159   :  { %v107_v39 = vor.u32 %v106_v37, %v105_v36  ;;  %v112_v40 = vcvt.s32.f32 %v111_v38  ;;  %vm110_vm2 = vcmp.lt.f32.partialorder %v109_v41, 8388608.0 }
 0x15b   :  { %v108_v42 = vsel %vm102_vm1, %v107_v39, %v69_v30  ;;  %v113_v43 = vand.u32 2147483647, %v112_v40 }
 0x15c   :  { %v99_v45 = vclamps-f32 %v108_v42, 127.0 }
 0x15d   :  { %v115_v46 = vor.u32 %v114_v44, %v113_v43 }
 0x15e   :  { %v77_v47 = vmul.f32 %v99_v45, %v65_v25 }
 0x15f   :  { %v116_v48 = vsel %vm110_vm2, %v115_v46, %v70_v34 }
 0x160   :  { %79 = vst.msk [vmem:[#allocation5] sm:$0xff] %vm31_vm0, %v77_v47  ;;  %v100_v49 = vclamps-f32 %v116_v48, 127.0 }
 0x162   :  { %v78_v50 = vmul.f32 %v100_v49, %v66_v28 }
 0x164   :  { %80 = vst.msk [vmem:[#allocation5 + $0x8] sm:$0xff] %vm31_vm0, %v78_v50 }
 0x165   :  { %160 = shalt.err (!%p157_p9)
}
 0x166   :  { %92 = dma.vmem_to_hbm [thread:$0]  %s87_s17, 256, %s215_s2, [#allocation4], %s174_s12, %s174_s12, %s175_s13  }
 0x167   :  { %171 = dma.done.wait [#allocation4], 256  }
 0x168   :  { %172 = vsyncadd [#allocation4], 4294967040 }
 0x169   :  { %96 = vsyncpa [#allocation3], 1 }
 0x16a   :  { %97 = vsyncpa [#allocation4], 1 }

</bundles_post_ra>
